<compile_context>
chip_gen: v7x
topology: tpu7x:2x2x1
jax: 0.10.0
libtpu: 0.0.40
codegen_flags: <defaults>
</compile_context>

<pallas_src>
import jax
import jax.numpy as jnp
import numpy as np
from jax.experimental import pallas as pl
from jax.experimental.pallas import tpu as pltpu

# ----------------------------------------------------------------------------
# Module configuration: Conv_block(in_c=4, out_c=8, kernel=(3,3), stride=(1,1),
# padding=(1,1), groups=1) and small example shapes.
# ----------------------------------------------------------------------------
N, CIN, H, W = 2, 4, 16, 16
COUT = 8
KH, KW = 3, 3
SH, SW = 1, 1
PH, PW = 1, 1
EPS = 1e-5  # BatchNorm2d default eps

HO = (H + 2 * PH - KH) // SH + 1
WO = (W + 2 * PW - KW) // SW + 1
M = N * HO * WO                      # output pixels over the batch (lane axis)
K = KH * KW * CIN                    # true contraction length (36)
K_PAD = ((K + 7) // 8) * 8           # padded to a multiple of 8 sublanes (40)


# ----------------------------------------------------------------------------
# Fused kernel: one im2col MXU matmul + BN (batch stats) + PReLU.
#   x_ref : (K_PAD, M)   lane-dense im2col patch matrix (zero-padded rows)
#   w_ref : (COUT, K_PAD) conv weights, tap-major then input channel
#   p_ref : (COUT, 3)    packed [gamma, beta, alpha]
#   o_ref : (COUT, M)    channel-major, lane-dense output
# ----------------------------------------------------------------------------
def fused_conv_bn_prelu_kernel(x_ref, w_ref, p_ref, o_ref):
    # Single matmul: (COUT, K_PAD) @ (K_PAD, M) -> (COUT, M), f32 accumulate.
    acc = jnp.dot(w_ref[...], x_ref[...],
                  preferred_element_type=jnp.float32)        # (COUT, M)

    # BatchNorm2d (training mode): biased batch statistics over (N, H, W),
    # two-pass (subtract-mean) variance for numerical robustness.
    inv_n = 1.0 / float(M)
    mean = jnp.sum(acc, axis=1, keepdims=True) * inv_n        # (COUT, 1)
    centered = acc - mean
    var = jnp.sum(centered * centered, axis=1, keepdims=True) * inv_n

    gamma = p_ref[:, 0:1]                                     # (COUT, 1)
    beta = p_ref[:, 1:2]
    alpha = p_ref[:, 2:3]                                     # per-channel PReLU

    scale = gamma * jax.lax.rsqrt(var + EPS)
    y = centered * scale + beta                               # one FMA / element
    o_ref[...] = jnp.where(y >= 0, y, alpha * y)              # PReLU


# ----------------------------------------------------------------------------
# Wrapper (NCHW interface, matching the PyTorch module)
# ----------------------------------------------------------------------------
def conv_block(x_nchw, w_oihw, gamma, beta, alpha):
    # NCHW -> NHWC + spatial zero-pad, then im2col — all cheap XLA-side
    # relayout at this size, and it hands the kernel lane-dense operands.
    x = jnp.transpose(x_nchw, (0, 2, 3, 1)).astype(jnp.float32)
    xp = jnp.pad(x, ((0, 0), (PH, PH), (PW, PW), (0, 0)))     # (N, HP, WP, CIN)

    # im2col: column index k = (i*KW + j)*CIN + c, row index m = flat (n,ho,wo)
    cols = []
    for i in range(KH):
        for j in range(KW):
            patch = xp[:, i:i + HO * SH:SH, j:j + WO * SW:SW, :]  # (N,HO,WO,CIN)
            cols.append(patch.reshape(M, CIN))
    patches = jnp.concatenate(cols, axis=1)                   # (M, K)
    patches = jnp.pad(patches.T, ((0, K_PAD - K), (0, 0)))    # (K_PAD, M)

    # OIHW -> (COUT, K): index o, (i*KW + j)*CIN + c; zero-pad K -> K_PAD.
    w2d = jnp.transpose(w_oihw, (0, 2, 3, 1)).reshape(COUT, K).astype(jnp.float32)
    w2d = jnp.pad(w2d, ((0, 0), (0, K_PAD - K)))              # (COUT, K_PAD)

    # Pack BN/PReLU parameters into a single (COUT, 3) tile -> one tiny DMA.
    params = jnp.stack([gamma, beta, alpha], axis=1).astype(jnp.float32)

    out_cm = pl.pallas_call(
        fused_conv_bn_prelu_kernel,
        out_shape=jax.ShapeDtypeStruct((COUT, M), jnp.float32),
        in_specs=[pl.BlockSpec(memory_space=pltpu.MemorySpace.VMEM)] * 3,
        out_specs=pl.BlockSpec(memory_space=pltpu.MemorySpace.VMEM),
        compiler_params=pltpu.CompilerParams(
            # Whole problem (~100 KiB resident) fits trivially; explicit limit
            # keeps the budget visible when porting to v7x (32 MiB default).
            vmem_limit_bytes=16 * 1024 * 1024),
    )(patches, w2d, params)

    # (COUT, N*HO*WO) -> (N, COUT, HO, WO)  (cheap leading-dim transpose in XLA)
    return jnp.transpose(out_cm.reshape(COUT, N, HO, WO), (1, 0, 2, 3))


# ----------------------------------------------------------------------------
# Pure-JAX reference (same semantics as the PyTorch module in training mode).
# ----------------------------------------------------------------------------
def conv_block_ref(x_nchw, w_oihw, gamma, beta, alpha):
    y = jax.lax.conv_general_dilated(
        x_nchw, w_oihw, (SH, SW), ((PH, PH), (PW, PW)),
        dimension_numbers=("NCHW", "OIHW", "NCHW"))
    mean = y.mean(axis=(0, 2, 3), keepdims=True)
    var = y.var(axis=(0, 2, 3), keepdims=True)  # biased, like BN training mode
    yhat = (y - mean) / jnp.sqrt(var + EPS)
    yhat = yhat * gamma.reshape(1, -1, 1, 1) + beta.reshape(1, -1, 1, 1)
    return jnp.where(yhat >= 0, yhat, alpha.reshape(1, -1, 1, 1) * yhat)


if __name__ == "__main__":
    key = jax.random.PRNGKey(0)
    k_x, k_w, k_g, k_b, k_a = jax.random.split(key, 5)

    x = jax.random.normal(k_x, (N, CIN, H, W), jnp.float32)
    # Deterministic synthetic parameters (shapes match the PyTorch module).
    w_oihw = 0.1 * jax.random.normal(k_w, (COUT, CIN, KH, KW), jnp.float32)
    gamma = 1.0 + 0.1 * jax.random.normal(k_g, (COUT,), jnp.float32)
    beta = 0.1 * jax.random.normal(k_b, (COUT,), jnp.float32)
    alpha = 0.25 + 0.05 * jax.random.normal(k_a, (COUT,), jnp.float32)  # PReLU

    fn = jax.jit(conv_block)
    out = fn(x, w_oihw, gamma, beta, alpha)
    out = jax.block_until_ready(out)

    ref = conv_block_ref(x, w_oihw, gamma, beta, alpha)
    np.testing.assert_allclose(np.asarray(out), np.asarray(ref),
                               rtol=2e-4, atol=2e-4)

    print("KERNEL_OK")
</pallas_src>

<mosaic_0001>
module attributes {stable_mosaic.version = 11 : i64} {
  func.func @fused_conv_bn_prelu_kernel(%arg0: memref<40x512xf32, #tpu.memory_space<vmem>>, %arg1: memref<8x40xf32, #tpu.memory_space<vmem>>, %arg2: memref<8x3xf32, #tpu.memory_space<vmem>>, %arg3: memref<8x512xf32, #tpu.memory_space<vmem>>) attributes {dimension_semantics = [], scalar_prefetch = 0 : i64, scratch_operands = 0 : i64, tpu.core_type = #tpu.core_type<tc>} {
    %c0 = arith.constant 0 : index
    %c0_0 = arith.constant 0 : index
    %0 = vector.load %arg1[%c0, %c0_0] : memref<8x40xf32, #tpu.memory_space<vmem>>, vector<8x40xf32>
    %c0_1 = arith.constant 0 : index
    %c0_2 = arith.constant 0 : index
    %1 = vector.load %arg0[%c0_1, %c0_2] : memref<40x512xf32, #tpu.memory_space<vmem>>, vector<40x512xf32>
    %cst = arith.constant dense<0.000000e+00> : vector<8x512xf32>
    %2 = tpu.matmul %0, %1, %cst {dimension_numbers = #tpu.dot_dimension_numbers<[1], [0], [0], [1], [0, 0, 1, 1], [], []>} : vector<8x40xf32>, vector<40x512xf32>, vector<8x512xf32> -> vector<8x512xf32>
    %cst_3 = arith.constant dense<0.000000e+00> : vector<8xf32>
    %3 = vector.multi_reduction <add>, %2, %cst_3 [1] : vector<8x512xf32> to vector<8xf32>
    %4 = vector.shape_cast %3 : vector<8xf32> to vector<8x1xf32>
    %cst_4 = arith.constant 0.001953125 : f32
    %5 = vector.broadcast %cst_4 : f32 to vector<8x1xf32>
    %6 = arith.mulf %4, %5 : vector<8x1xf32>
    %7 = vector.broadcast %6 : vector<8x1xf32> to vector<8x512xf32>
    %8 = arith.subf %2, %7 : vector<8x512xf32>
    %9 = arith.mulf %8, %8 : vector<8x512xf32>
    %cst_5 = arith.constant dense<0.000000e+00> : vector<8xf32>
    %10 = vector.multi_reduction <add>, %9, %cst_5 [1] : vector<8x512xf32> to vector<8xf32>
    %11 = vector.shape_cast %10 : vector<8xf32> to vector<8x1xf32>
    %cst_6 = arith.constant 0.001953125 : f32
    %12 = vector.broadcast %cst_6 : f32 to vector<8x1xf32>
    %13 = arith.mulf %11, %12 : vector<8x1xf32>
    %c0_7 = arith.constant 0 : index
    %c0_8 = arith.constant 0 : index
    %14 = vector.load %arg2[%c0_7, %c0_8] : memref<8x3xf32, #tpu.memory_space<vmem>>, vector<8x1xf32>
    %c0_9 = arith.constant 0 : index
    %c1 = arith.constant 1 : index
    %15 = vector.load %arg2[%c0_9, %c1] : memref<8x3xf32, #tpu.memory_space<vmem>>, vector<8x1xf32>
    %c0_10 = arith.constant 0 : index
    %c2 = arith.constant 2 : index
    %16 = vector.load %arg2[%c0_10, %c2] : memref<8x3xf32, #tpu.memory_space<vmem>>, vector<8x1xf32>
    %cst_11 = arith.constant 9.99999974E-6 : f32
    %17 = vector.broadcast %cst_11 : f32 to vector<8x1xf32>
    %18 = arith.addf %13, %17 : vector<8x1xf32>
    %19 = math.rsqrt %18 : vector<8x1xf32>
    %20 = arith.mulf %14, %19 : vector<8x1xf32>
    %21 = vector.broadcast %20 : vector<8x1xf32> to vector<8x512xf32>
    %22 = arith.mulf %8, %21 : vector<8x512xf32>
    %23 = vector.broadcast %15 : vector<8x1xf32> to vector<8x512xf32>
    %24 = arith.addf %22, %23 : vector<8x512xf32>
    %cst_12 = arith.constant 0.000000e+00 : f32
    %25 = vector.broadcast %cst_12 : f32 to vector<8x512xf32>
    %26 = arith.cmpf oge, %24, %25 : vector<8x512xf32>
    %27 = vector.broadcast %16 : vector<8x1xf32> to vector<8x512xf32>
    %28 = arith.mulf %27, %24 : vector<8x512xf32>
    %29 = arith.select %26, %24, %28 : vector<8x512xi1>, vector<8x512xf32>
    %c0_13 = arith.constant 0 : index
    %c0_14 = arith.constant 0 : index
    %30 = vector.load %arg3[%c0_13, %c0_14] : memref<8x512xf32, #tpu.memory_space<vmem>>, vector<8x512xf32>
    tpu.vector_store %arg3[%c0_13, %c0_14], %29 {strides = array<i32>} : memref<8x512xf32, #tpu.memory_space<vmem>>, vector<8x512xf32>,
    return
  }
}

</mosaic_0001>

<bundles_post_ra>
// kernel: conv_block.1
= control target key start
LH: loop header
LB: loop body
LE: loop exit
PB: predicated region body
PF: predicated region fallthrough
CT: control target
= control target key end

     0   :  { %v274_v3 = vmov 0.0   ;;  %vm35_vm0 = vcmask 326656   ;;  %v275_v50 = vmov 0   ;;  %v276_v52 = vmov 2   ;;  %s376_s0 = inlined_call_operand.vmem [shape: f32[40,512], index: 0, kind: input, shape index: {}]   ;;  %s377_s1 = inlined_call_operand.vmem [shape: f32[8,40], index: 1, kind: input, shape index: {}]   ;;  %s378_s2 = inlined_call_operand.vmem [shape: f32[8,3], index: 2, kind: input, shape index: {}]   ;;  %s379_s3 = inlined_call_operand.vmem [shape: f32[8,512], index: 3, kind: output, shape index: {}]  }
   0x1   :  { %v16_v0 = vld [vmem:[%s376_s0 + $0x8] sm:$0xff]  ;;  %v15_v2 = vld [vmem:[%s376_s0] sm:$0xff]  ;;  %103 = vmatprep.mubr.f32.mxu0 %v274_v3  ;;  %174 = vmatprep.mubr.f32.mxu1 %v274_v3  ;;  %v18_v6 = vld [vmem:[%s376_s0 + $0x18] sm:$0xff]  ;;  %v277_v58 = vmov 1  }
   0x2   :  { %v20_v1 = vld [vmem:[%s376_s0 + $0x28] sm:$0xff]  ;;  %v19_v5 = vld [vmem:[%s376_s0 + $0x20] sm:$0xff]  ;;  %v22_v7 = vld [vmem:[%s376_s0 + $0x38] sm:$0xff]  ;;  %269 = vset.pattern.permute.xlu1 %v275_v50  ;;  %271 = vset.pattern.permute.xlu0 %v276_v52 }
   0x3   :  { %v249_v4 = vpack.c.bf16 %v20_v1, %v16_v0  ;;  %v251_v8 = vpack.c.bf16 %v19_v5, %v15_v2  ;;  %v257_v9 = vpack.c.bf16 %v22_v7, %v18_v6  ;;  %v17_v10 = vld [vmem:[%s376_s0 + $0x10] sm:$0xff]  ;;  %v24_v12 = vld [vmem:[%s376_s0 + $0x48] sm:$0xff]  ;;  %v23_v15 = vld [vmem:[%s376_s0 + $0x40] sm:$0xff] }
   0x4   :  { %v21_v11 = vld [vmem:[%s376_s0 + $0x30] sm:$0xff]  ;;  %v28_v14 = vld [vmem:[%s376_s0 + $0x68] sm:$0xff]  ;;  %v27_v16 = vld [vmem:[%s376_s0 + $0x60] sm:$0xff] }
   0x5   :  { %250 = vmatprep.subr.bf16.mxu0 %v249_v4  ;;  %v259_v13 = vpack.c.bf16 %v21_v11, %v17_v10  ;;  %258 = vmatprep.subr.bf16.mxu1 %v257_v9  ;;  %v253_v17 = vpack.c.bf16 %v28_v14, %v24_v12  ;;  %v255_v18 = vpack.c.bf16 %v27_v16, %v23_v15  ;;  %v26_v19 = vld [vmem:[%s376_s0 + $0x58] sm:$0xff]  ;;  %v25_v21 = vld [vmem:[%s376_s0 + $0x50] sm:$0xff]  ;;  %v32_v25 = vld [vmem:[%s376_s0 + $0x88] sm:$0xff] }
   0x6   :  { %252 = vmatpush1.bf16.msra.mxu0 %v251_v8  ;;  %v30_v20 = vld [vmem:[%s376_s0 + $0x78] sm:$0xff]  ;;  %v29_v23 = vld [vmem:[%s376_s0 + $0x70] sm:$0xff]  ;;  %v31_v27 = vld [vmem:[%s376_s0 + $0x80] sm:$0xff] }
   0x7   :  { %260 = vmatpush1.bf16.msra.mxu1 %v259_v13  ;;  %v261_v22 = vpack.c.bf16 %v30_v20, %v26_v19  ;;  %254 = vmatprep.subr.bf16.mxu0 %v253_v17  ;;  %v263_v24 = vpack.c.bf16 %v29_v23, %v25_v21  ;;  %v34_v26 = vld [vmem:[%s376_s0 + $0x98] sm:$0xff]  ;;  %v14_v28 = vld [vmem:[%s377_s1] sm:$0xff]  ;;  %v33_v29 = vld [vmem:[%s376_s0 + $0x90] sm:$0xff] }
   0x8   :  { %v201_v51 = vld [vmem:[%s378_s2] sm:$0xff] }
   0x9   :  { %262 = vmatprep.subr.bf16.mxu1 %v261_v22 }
   0xa   :  { %256 = vmatpush1.bf16.msra.mxu0 %v255_v18 }
   0xb   :  { %264 = vmatpush1.bf16.msra.mxu1 %v263_v24  ;;  %47 = vmatprep.subr.mxu0 %v32_v25 }
   0xc   :  { %118 = vmatprep.subr.mxu1 %v34_v26 }
   0xe   :  { %48 = vmatpush1.msra.mxu0 %v31_v27 }
   0xf   :  { %247 = vmatmul.mubr.msk.f32.vlgmr.msra.gmra.mrb[0].mxu0 %vm35_vm0, %v14_v28  ;;  %119 = vmatpush1.msra.mxu1 %v33_v29 }
  0x10   :  { %248 = vmatmul.mubr.msk.f32.vlgmr.msra.gmra.mrb[0].mxu1 %vm35_vm0, %v14_v28 }
  0xe2   :  { %v105_v30 = vpop.f32.mrb[0].mxu0 }
  0xe3   :  { %v107_v31 = vpop.f32.mrb[1].mxu0  ;;  %v176_v32 = vpop.f32.mrb[0].mxu1 }
  0xe4   :  { %v181_v33 = vadd.f32 %v107_v31, %v105_v30  ;;  %v178_v34 = vpop.f32.mrb[1].mxu1 }
  0xe6   :  { %v182_v35 = vadd.f32 %v181_v33, %v176_v32 }
  0xe8   :  { %v183_v36 = vadd.f32 %v182_v35, %v178_v34 }
  0xea   :  { %184 = vadd.xlane.f32.xlu0 %v183_v36 }
 0x177   :  { %v185_v37 = vpop.xlane.xlu0 %184 }
 0x178   :  { %v186_v38 = vmul.f32 0.001953125, %v185_v37 }
 0x17a   :  { %v187_v39 = vsub.f32 %v105_v30, %v186_v38  ;;  %v188_v40 = vsub.f32 %v107_v31, %v186_v38  ;;  %v189_v41 = vsub.f32 %v176_v32, %v186_v38  ;;  %v190_v42 = vsub.f32 %v178_v34, %v186_v38 }
 0x17c   :  { %v191_v43 = vmul.f32 %v187_v39, %v187_v39  ;;  %v192_v44 = vmul.f32 %v188_v40, %v188_v40  ;;  %v193_v45 = vmul.f32 %v189_v41, %v189_v41  ;;  %v194_v47 = vmul.f32 %v190_v42, %v190_v42 }
 0x17e   :  { %v195_v46 = vadd.f32 %v192_v44, %v191_v43 }
 0x180   :  { %v196_v48 = vadd.f32 %v195_v46, %v193_v45 }
 0x182   :  { %v197_v49 = vadd.f32 %v196_v48, %v194_v47 }
 0x184   :  { %198 = vadd.xlane.f32.xlu0 %v197_v49 }
 0x19a   :  { %228 = vperm.xlu0 %271, %v201_v51  }
 0x211   :  { %v199_v53 = vpop.xlane.xlu0 %198 }
 0x212   :  { %v200_v54 = vmul.f32 0.001953125, %v199_v53 }
 0x214   :  { %v202_v55 = vadd.f32 1e-05, %v200_v54 }
 0x216   :  { %272 = vrsqrt.f32 %v202_v55 }
 0x219   :  { %v229_v5 = vpop.permute.xlu0 %228 }
 0x220   :  { %v273_v56 = vpop.eup %272 }
 0x221   :  { %v204_v57 = vmul.f32 %v273_v56, %v201_v51 }
 0x223   :  { %207 = vperm.xlu1 %269, %v204_v57  }
 0x227   :  { %270 = vset.pattern.permute.xlu1 %v277_v58 }
 0x228   :  { %216 = vperm.xlu1 %270, %v201_v51  }
 0x2a2   :  { %v208_v59 = vpop.permute.xlu1 %207 }
 0x2a3   :  { %v210_v60 = vmul.f32 %v208_v59, %v187_v39  ;;  %v211_v61 = vmul.f32 %v208_v59, %v188_v40  ;;  %v212_v62 = vmul.f32 %v208_v59, %v189_v41  ;;  %v213_v63 = vmul.f32 %v208_v59, %v190_v42 }
 0x2a7   :  { %v217_v0 = vpop.permute.xlu1 %216 }
 0x2a8   :  { %v219_v1 = vadd.f32 %v217_v0, %v210_v60  ;;  %v220_v2 = vadd.f32 %v217_v0, %v211_v61  ;;  %v221_v3 = vadd.f32 %v217_v0, %v212_v62  ;;  %v222_v4 = vadd.f32 %v217_v0, %v213_v63 }
 0x2aa   :  { %vm223_vm1 = vcmp.ge.f32.partialorder %v219_v1, 0.0  ;;  %vm224_vm2 = vcmp.ge.f32.partialorder %v220_v2, 0.0  ;;  %vm225_vm3 = vcmp.ge.f32.partialorder %v221_v3, 0.0  ;;  %vm226_vm4 = vcmp.ge.f32.partialorder %v222_v4, 0.0 }
 0x2ab   :  { %v231_v6 = vmul.f32 %v229_v5, %v219_v1  ;;  %v232_v7 = vmul.f32 %v229_v5, %v220_v2  ;;  %v233_v8 = vmul.f32 %v229_v5, %v221_v3  ;;  %v234_v9 = vmul.f32 %v229_v5, %v222_v4 }
 0x2ad   :  { %v235_v10 = vsel %vm223_vm1, %v219_v1, %v231_v6  ;;  %v236_v11 = vsel %vm224_vm2, %v220_v2, %v232_v7  ;;  %v237_v12 = vsel %vm225_vm3, %v221_v3, %v233_v8  ;;  %v238_v13 = vsel %vm226_vm4, %v222_v4, %v234_v9 }
 0x2ae   :  { %239 = vst [vmem:[%s379_s3] sm:$0xff] %v235_v10  ;;  %240 = vst [vmem:[%s379_s3 + $0x8] sm:$0xff] %v236_v11 }
 0x2af   :  { %241 = vst [vmem:[%s379_s3 + $0x10] sm:$0xff] %v237_v12  ;;  %242 = vst [vmem:[%s379_s3 + $0x18] sm:$0xff] %v238_v13 }

</bundles_post_ra>
